<compile_context>
chip_gen: v5e
topology: v5e:2x2
jax: 0.10.0
libtpu: 0.0.40
codegen_flags: <defaults>
</compile_context>

<pallas_src>
import jax
import jax.numpy as jnp
from jax.experimental import pallas as pl
from jax.experimental.pallas import tpu as pltpu


def mlp_kernel(x_ref, w1_ref, b1_ref, w2_ref, b2_ref, out_ref):
    # (TB, Din) @ (Din, Dh) -> (TB, Dh); BatchNorm already folded into w1/b1.
    h = jnp.dot(x_ref[...], w1_ref[...], preferred_element_type=jnp.float32)
    h = jnp.maximum(h + b1_ref[...], 0.0)            # bias + ReLU (Dropout(0.0) = id)
    # (TB, Dh) @ (Dh, Dout) -> (TB, Dout)
    y = jnp.dot(h.astype(w2_ref.dtype), w2_ref[...],
                preferred_element_type=jnp.float32)
    out_ref[...] = (y + b2_ref[...]).astype(out_ref.dtype)


def _vmem_limit_bytes(tb, din, dh, dout, itemsize):
    # 2 pipeline buffers for the batch-tiled input/output blocks + resident
    # weights/biases + f32 hidden intermediate, with 2x headroom.
    blocks = 2 * (tb * din + tb * dout) * itemsize
    weights = (din * dh + dh + dh * dout + dout) * itemsize
    interm = tb * dh * 4
    need = 2 * (blocks + weights + interm)
    return int(min(max(need, 16 * 1024 * 1024), 48 * 1024 * 1024))


def mlp_forward(x, folded, *, block_b=512):
    """x: (B, dim_in) f32.  folded: BN-folded params (see fold_params)."""
    B, Din = x.shape
    Dh = folded["w1_t"].shape[1]
    Dout = folded["w2_t"].shape[1]
    TB = B if B <= block_b else block_b              # batch tile (8-aligned or == B)

    flops = 2 * B * (Din * Dh + Dh * Dout)
    bytes_accessed = (B * (Din + Dout) + Din * Dh + Dh + Dh * Dout + Dout) \
        * x.dtype.itemsize

    return pl.pallas_call(
        mlp_kernel,
        out_shape=jax.ShapeDtypeStruct((B, Dout), x.dtype),
        grid=(pl.cdiv(B, TB),),
        in_specs=[
            pl.BlockSpec((TB, Din), lambda i: (i, 0)),    # batch-tiled input
            pl.BlockSpec((Din, Dh), lambda i: (0, 0)),    # W1 (BN-folded, transposed)
            pl.BlockSpec((1, Dh), lambda i: (0, 0)),      # b1 (BN-folded)
            pl.BlockSpec((Dh, Dout), lambda i: (0, 0)),   # W2 (transposed)
            pl.BlockSpec((1, Dout), lambda i: (0, 0)),    # b2
        ],
        out_specs=pl.BlockSpec((TB, Dout), lambda i: (i, 0)),
        compiler_params=pltpu.CompilerParams(
            dimension_semantics=("parallel",),
            vmem_limit_bytes=_vmem_limit_bytes(TB, Din, Dh, Dout,
                                               x.dtype.itemsize),
        ),
        cost_estimate=pl.CostEstimate(flops=flops, transcendentals=0,
                                      bytes_accessed=bytes_accessed),
    )(x, folded["w1_t"], folded["b1"], folded["w2_t"], folded["b2"])


def init_params(key, dim_in, dim_hidden, dim_out):
    """Synthetic params mimicking nn.Linear / nn.BatchNorm1d (eval mode)."""
    ks = jax.random.split(key, 6)
    b1_bound = 1.0 / jnp.sqrt(dim_in)
    w1 = jax.random.uniform(ks[0], (dim_hidden, dim_in), jnp.float32,
                            -b1_bound, b1_bound)
    b1 = jax.random.uniform(ks[1], (dim_hidden,), jnp.float32,
                            -b1_bound, b1_bound)
    b2_bound = 1.0 / jnp.sqrt(dim_hidden)
    w2 = jax.random.uniform(ks[2], (dim_out, dim_hidden), jnp.float32,
                            -b2_bound, b2_bound)
    b2 = jax.random.uniform(ks[3], (dim_out,), jnp.float32,
                            -b2_bound, b2_bound)
    # BatchNorm1d affine params + non-trivial running statistics.
    gamma = 1.0 + 0.1 * jax.random.normal(ks[4], (dim_hidden,), jnp.float32)
    beta = 0.1 * jax.random.normal(ks[5], (dim_hidden,), jnp.float32)
    mean = 0.05 * jnp.arange(dim_hidden, dtype=jnp.float32)
    var = 1.0 + 0.01 * jnp.arange(dim_hidden, dtype=jnp.float32)
    return dict(w1=w1, b1=b1, w2=w2, b2=b2,
                bn_gamma=gamma, bn_beta=beta, bn_mean=mean, bn_var=var)


def fold_params(p, eps=1e-5):
    """Fold eval-mode BatchNorm into the first Linear; pre-transpose weights."""
    s = p["bn_gamma"] / jnp.sqrt(p["bn_var"] + eps)      # (Dh,)
    t = p["bn_beta"] - p["bn_mean"] * s                  # (Dh,)
    w1f = p["w1"] * s[:, None]                           # (Dh, Din)
    b1f = p["b1"] * s + t                                # (Dh,)
    return {
        "w1_t": jnp.asarray(w1f.T),                      # (Din, Dh)
        "b1": b1f.reshape(1, -1),                        # (1, Dh)
        "w2_t": jnp.asarray(p["w2"].T),                  # (Dh, Dout)
        "b2": p["b2"].reshape(1, -1),                    # (1, Dout)
    }


def mlp_ref(x, p, eps=1e-5):
    """Pure-JAX reference matching the PyTorch module (eval mode)."""
    h = x @ p["w1"].T + p["b1"]
    h = (h - p["bn_mean"]) / jnp.sqrt(p["bn_var"] + eps) * p["bn_gamma"] \
        + p["bn_beta"]
    h = jnp.maximum(h, 0.0)
    # Dropout(0.0) -> identity
    return h @ p["w2"].T + p["b2"]


if __name__ == "__main__":
    B, dim_in, dim_hidden, dim_out = 8, 32, 64, 16       # num_hidden=2

    key = jax.random.PRNGKey(0)
    kx, kp = jax.random.split(key)
    x = jax.random.normal(kx, (B, dim_in), jnp.float32)
    params = init_params(kp, dim_in, dim_hidden, dim_out)
    folded = fold_params(params)

    out = mlp_forward(x, folded)
    jax.block_until_ready(out)

    ref = mlp_ref(x, params)
    assert out.shape == (B, dim_out)
    assert jnp.allclose(out, ref, atol=1e-4, rtol=1e-4)

    print("KERNEL_OK")
</pallas_src>

<mosaic_0001>
module attributes {stable_mosaic.version = 11 : i64} {
  func.func @mlp_kernel(%arg0: i32, %arg1: memref<8x32xf32, #tpu.memory_space<vmem>>, %arg2: memref<32x64xf32, #tpu.memory_space<vmem>>, %arg3: memref<1x64xf32, #tpu.memory_space<vmem>>, %arg4: memref<64x16xf32, #tpu.memory_space<vmem>>, %arg5: memref<1x16xf32, #tpu.memory_space<vmem>>, %arg6: memref<8x16xf32, #tpu.memory_space<vmem>>) attributes {dimension_semantics = [#tpu.dimension_semantics<parallel>], iteration_bounds = array<i64: 1>, scalar_prefetch = 0 : i64, scratch_operands = 0 : i64, tpu.core_type = #tpu.core_type<tc>, window_params = [{transform_indices = @transform_0, window_bounds = array<i64: 8, 32>}, {pipeline_mode = #tpu.pipeline_mode<synchronous>, transform_indices = @transform_1, window_bounds = array<i64: 32, 64>}, {pipeline_mode = #tpu.pipeline_mode<synchronous>, transform_indices = @transform_2, window_bounds = array<i64: 1, 64>}, {pipeline_mode = #tpu.pipeline_mode<synchronous>, transform_indices = @transform_3, window_bounds = array<i64: 64, 16>}, {pipeline_mode = #tpu.pipeline_mode<synchronous>, transform_indices = @transform_4, window_bounds = array<i64: 1, 16>}, {transform_indices = @transform_5, window_bounds = array<i64: 8, 16>}]} {
    %c0 = arith.constant 0 : index
    %c0_0 = arith.constant 0 : index
    %0 = vector.load %arg1[%c0, %c0_0] : memref<8x32xf32, #tpu.memory_space<vmem>>, vector<8x32xf32>
    %c0_1 = arith.constant 0 : index
    %c0_2 = arith.constant 0 : index
    %1 = vector.load %arg2[%c0_1, %c0_2] : memref<32x64xf32, #tpu.memory_space<vmem>>, vector<32x64xf32>
    %cst = arith.constant dense<0.000000e+00> : vector<8x64xf32>
    %2 = tpu.matmul %0, %1, %cst {dimension_numbers = #tpu.dot_dimension_numbers<[1], [0], [0], [1], [0, 0, 1, 1], [], []>} : vector<8x32xf32>, vector<32x64xf32>, vector<8x64xf32> -> vector<8x64xf32>
    %c0_3 = arith.constant 0 : index
    %c0_4 = arith.constant 0 : index
    %3 = vector.load %arg3[%c0_3, %c0_4] : memref<1x64xf32, #tpu.memory_space<vmem>>, vector<1x64xf32>
    %4 = vector.broadcast %3 : vector<1x64xf32> to vector<8x64xf32>
    %5 = arith.addf %2, %4 : vector<8x64xf32>
    %cst_5 = arith.constant 0.000000e+00 : f32
    %6 = vector.broadcast %cst_5 : f32 to vector<8x64xf32>
    %7 = arith.maximumf %5, %6 : vector<8x64xf32>
    %c0_6 = arith.constant 0 : index
    %c0_7 = arith.constant 0 : index
    %8 = vector.load %arg4[%c0_6, %c0_7] : memref<64x16xf32, #tpu.memory_space<vmem>>, vector<64x16xf32>
    %cst_8 = arith.constant dense<0.000000e+00> : vector<8x16xf32>
    %9 = tpu.matmul %7, %8, %cst_8 {dimension_numbers = #tpu.dot_dimension_numbers<[1], [0], [0], [1], [0, 0, 1, 1], [], []>} : vector<8x64xf32>, vector<64x16xf32>, vector<8x16xf32> -> vector<8x16xf32>
    %c0_9 = arith.constant 0 : index
    %c0_10 = arith.constant 0 : index
    %10 = vector.load %arg5[%c0_9, %c0_10] : memref<1x16xf32, #tpu.memory_space<vmem>>, vector<1x16xf32>
    %11 = vector.broadcast %10 : vector<1x16xf32> to vector<8x16xf32>
    %12 = arith.addf %9, %11 : vector<8x16xf32>
    %c0_11 = arith.constant 0 : index
    %c0_12 = arith.constant 0 : index
    %13 = vector.load %arg6[%c0_11, %c0_12] : memref<8x16xf32, #tpu.memory_space<vmem>>, vector<8x16xf32>
    tpu.vector_store %arg6[%c0_11, %c0_12], %12 {strides = array<i32>} : memref<8x16xf32, #tpu.memory_space<vmem>>, vector<8x16xf32>,
    return
  }
  func.func @transform_0(%arg0: i32) -> (i32, i32) {
    %c0_i32 = arith.constant 0 : i32
    %c0_i32_0 = arith.constant 0 : i32
    return %arg0, %c0_i32 : i32, i32
  }
  func.func @transform_1(%arg0: i32) -> (i32, i32) {
    %c0_i32 = arith.constant 0 : i32
    %c0_i32_0 = arith.constant 0 : i32
    %c0_i32_1 = arith.constant 0 : i32
    return %c0_i32, %c0_i32_0 : i32, i32
  }
  func.func @transform_2(%arg0: i32) -> (i32, i32) {
    %c0_i32 = arith.constant 0 : i32
    %c0_i32_0 = arith.constant 0 : i32
    %c0_i32_1 = arith.constant 0 : i32
    return %c0_i32, %c0_i32_0 : i32, i32
  }
  func.func @transform_3(%arg0: i32) -> (i32, i32) {
    %c0_i32 = arith.constant 0 : i32
    %c0_i32_0 = arith.constant 0 : i32
    %c0_i32_1 = arith.constant 0 : i32
    return %c0_i32, %c0_i32_0 : i32, i32
  }
  func.func @transform_4(%arg0: i32) -> (i32, i32) {
    %c0_i32 = arith.constant 0 : i32
    %c0_i32_0 = arith.constant 0 : i32
    %c0_i32_1 = arith.constant 0 : i32
    return %c0_i32, %c0_i32_0 : i32, i32
  }
  func.func @transform_5(%arg0: i32) -> (i32, i32) {
    %c0_i32 = arith.constant 0 : i32
    %c0_i32_0 = arith.constant 0 : i32
    return %arg0, %c0_i32 : i32, i32
  }
}

</mosaic_0001>

<bundles_post_ra>
// kernel: tpu_custom_call.1
= control target key start
LH: loop header
LB: loop body
LE: loop exit
PB: predicated region body
PF: predicated region fallthrough
CT: control target
= control target key end

     0   :  { %s219_s0 = inlined_call_operand.vmem [shape: f32[8,32], index: 0, kind: input, shape index: {}]   ;;  %s220_s1 = inlined_call_operand.vmem [shape: f32[32,64], index: 1, kind: input, shape index: {}]   ;;  %s221_s2 = inlined_call_operand.vmem [shape: f32[1,64], index: 2, kind: input, shape index: {}]   ;;  %s222_s3 = inlined_call_operand.vmem [shape: f32[64,16], index: 3, kind: input, shape index: {}]   ;;  %s223_s4 = inlined_call_operand.vmem [shape: f32[1,16], index: 4, kind: input, shape index: {}]   ;;  %s224_s5 = inlined_call_operand.hbm [shape: f32[8,16], index: 5, kind: output, shape index: {}]  }
   0x1   :  { %v25_v0 = vld [vmem:[%s220_s1 + $0x18] sm:$0xff]  ;;  %v24_v1 = vld [vmem:[%s220_s1 + $0x10] sm:$0xff]  ;;  %v23_v3 = vld [vmem:[%s220_s1 + $0x8] sm:$0xff] }
   0x2   :  { %46 = vmatpush.msra.mxu0 %v25_v0  ;;  %v62_v2 = vld [vmem:[%s222_s3 + $0x38] sm:$0xff]  ;;  %v61_v4 = vld [vmem:[%s222_s3 + $0x30] sm:$0xff]  ;;  %v60_v5 = vld [vmem:[%s222_s3 + $0x28] sm:$0xff] }
   0x3   :  { %79 = vmatpush.msra.mxu1 %v62_v2  ;;  %v22_v6 = vld [vmem:[%s220_s1] sm:$0xff] }
   0x4   :  { %47 = vmatpush.msra.mxu0 %v24_v1 }
   0x5   :  { %80 = vmatpush.msra.mxu1 %v61_v4 }
   0x6   :  { %10 = vsyncpa [#allocation3], 0  ;;  %48 = vmatpush.msra.mxu0 %v23_v3  ;;  %v21_v7 = vld [vmem:[%s219_s0] sm:$0xff]  ;;  %vm30_vm0 = vcmask 261120   ;;  %v58_v9 = vld [vmem:[%s222_s3 + $0x18] sm:$0xff]  ;;  %vm67_vm1 = vcmask 523264  }
   0x7   :  { %v59_v8 = vld [vmem:[%s222_s3 + $0x20] sm:$0xff]  ;;  %81 = vmatpush.msra.mxu1 %v60_v5  ;;  %v57_v10 = vld [vmem:[%s222_s3 + $0x10] sm:$0xff]  ;;  %v56_v11 = vld [vmem:[%s222_s3 + $0x8] sm:$0xff]  ;;  %s140_s21 = smov [#allocation2]   ;;  %vm91_vm2 = vcmask 130048  }
   0x8   :  { %49 = vmatpush.msra.mxu0 %v22_v6  ;;  %v55_v12 = vld [vmem:[%s222_s3] sm:$0xff]  ;;  %s98_s22 = sshll.u32 %s140_s21, 4  ;;  %s100_s3 = sshll.u32 %s224_s5, 4  ;;  %s99_s22 = int_to_ptr.vmem [resolvable:$true] %s98_s22  ;;  %s101_s3 = int_to_ptr.hbm [resolvable:$true] %s100_s3 }
   0x9   :  { %109 = vmatmul.msk.f32.vlgmr.msra.gmra.mxu0 %vm30_vm0, %v21_v7  ;;  %82 = vmatpush.msra.mxu1 %v59_v8  ;;  %v112_v13 = vld [vmem:[%s221_s2] ss:$0 sm:$0xff] }
   0xa   :  { %v113_v17 = vld [vmem:[%s223_s4] ss:$0 sm:$0xff] }
   0xb   :  { %83 = vmatpush.msra.mxu1 %v58_v9 }
   0xd   :  { %84 = vmatpush.msra.mxu1 %v57_v10 }
   0xf   :  { %85 = vmatpush.msra.mxu1 %v56_v11 }
  0x11   :  { %86 = vmatpush.msra.mxu1 %v55_v12 }
  0x86   :  { %v51_v14 = vpop.f32.mrf.mxu0 }
  0x87   :  { %v52_v15 = vadd.f32 %v112_v13, %v51_v14 }
  0x89   :  { %v54_v16 = vmax.f32 %v52_v15, 0.0 }
  0x8b   :  { %110 = vmatmul.msk.f32.vlgmr.msra.gmra.mxu1 %vm67_vm1, %v54_v16 }
 0x108   :  { %v88_v18 = vpop.f32.mrf.mxu1 }
 0x109   :  { %v89_v19 = vadd.f32 %v113_v17, %v88_v18 }
 0x10b   :  { %92 = vst.msk [vmem:[#allocation2] sm:$0xff] %vm91_vm2, %v89_v19 }
 0x10c   :  { %103 = dma.vmem_to_hbm [thread:$0]  %s99_s22, 128, %s101_s3, [#allocation3]  }
 0x10d   :  { %138 = dma.done.wait [#allocation3], 128  }
 0x10e   :  { %139 = vsyncadd [#allocation3], 4294967168 }
 0x10f   :  { %108 = vsyncpa [#allocation3], 1 }

</bundles_post_ra>
